<compile_context>
chip_gen: v7x
topology: tpu7x:2x2x1
jax: 0.10.0
libtpu: 0.0.40
codegen_flags: <defaults>
</compile_context>

<pallas_src>
import numpy as np
import jax
import jax.numpy as jnp
from jax.experimental import pallas as pl
from jax.experimental.pallas import tpu as pltpu

# ---- hyperparameters (tuner_params / dataset constants) ----
EMBED_SIZE = 32     # tuner_params['embed_size']
CONV_K     = 3      # conv_kernel_size
POOL_K     = 2      # pool_kernel_size
CONV_OUT   = 8      # conv_out_channels
NEIGH      = 8      # dataset.neigh_sample_num
HIDDEN     = 32     # tuner_params['hidden_size']
NUM_USERS  = 10
NUM_ITEMS  = 20
B          = 2      # batch
D          = 4      # items per user (items.shape[1])

CONVED   = NEIGH - (CONV_K - 1)                          # 6
POOLED   = (CONVED - (POOL_K - 1) - 1) // POOL_K + 1     # 3 (full windows only)
F_IN     = 2 * POOLED * CONV_OUT + EMBED_SIZE            # 80 = MLP input features
HALF     = 2 * POOLED * CONV_OUT                         # 48 columns per pool phase
NROWS    = 2 * NEIGH * EMBED_SIZE                        # 512 fused conv-weight rows
CONV_PAD = NROWS + 8                                     # 520 (weight + bias row, x8 pad)
HEAD_PAD = ((F_IN + 1 + 7) // 8) * 8                     # 88  (W1 + b1 row, x8 pad)
OUT_PAD  = 128                                           # lane-dense output width


def nncf_kernel(emb_ref, neigh_ref, pconv_ref, phead_ref, pout_ref, out_ref):
    """Fused NNCF forward: GMF elementwise + 1 conv matmul + pool/ReLU + MLP head."""
    E = EMBED_SIZE

    # GMF term: user_emb * items_emb (packed side by side in emb_ref).
    mf = emb_ref[:, :E] * emb_ref[:, E:]                                   # (BD, E)

    # Both conv branches as one matmul against the block-structured weight.
    wc = pconv_ref[:NROWS, :]                                              # (512, 96)
    bc = pconv_ref[pl.ds(NROWS, 1), :]                                     # (1, 96) bias row
    conv = jnp.dot(neigh_ref[...], wc, preferred_element_type=jnp.float32) + bc

    # MaxPool1d(k=2) == max over the two pool-phase column groups, then ReLU.
    feat = jnp.maximum(jnp.maximum(conv[:, :HALF], conv[:, HALF:2 * HALF]), 0.0)

    # Hidden layer: split W1 into mf-rows and feature-rows (avoids lane concat).
    # TODO(synk): Dropout layers are identity in inference mode; not applied.
    h = (jnp.dot(mf, phead_ref[:E, :], preferred_element_type=jnp.float32)
         + jnp.dot(feat, phead_ref[E:E + HALF, :], preferred_element_type=jnp.float32)
         + phead_ref[pl.ds(F_IN, 1), :])
    h = jnp.maximum(h, 0.0)

    # Output layer against zero-padded (HIDDEN, 128) weight -> lane-dense store.
    out_ref[...] = jnp.dot(h, pout_ref[...],
                           preferred_element_type=jnp.float32).astype(out_ref.dtype)


def nncf_forward(emb, neigh, p_conv, p_head, p_out):
    BD = emb.shape[0]
    vmem = pl.BlockSpec(memory_space=pltpu.MemorySpace.VMEM)
    return pl.pallas_call(
        nncf_kernel,
        out_shape=jax.ShapeDtypeStruct((BD, OUT_PAD), jnp.float32),
        in_specs=[vmem] * 5,
        out_specs=vmem,
    )(emb, neigh, p_conv, p_head, p_out)


# ---------------- wrapper-side weight restructuring ----------------
def build_conv_block(wu_t, bu, wi_t, bi):
    """torch Conv1d weights (C,E,K) -> fused (512, 96) weight + (96,) bias.

    Column layout: col = j*HALF + branch*(POOLED*C) + p*C + c,  t = p*POOL_K + j.
    Row layout:    row = branch*NEIGH*E + (t+k)*E + e.
    """
    Wc = np.zeros((NROWS, 2 * HALF), np.float32)
    bc = np.zeros((2 * HALF,), np.float32)
    for br, (wt, bt) in enumerate(((np.asarray(wu_t), np.asarray(bu)),
                                   (np.asarray(wi_t), np.asarray(bi)))):
        for j in range(POOL_K):
            for p in range(POOLED):
                t = p * POOL_K + j
                for c in range(CONV_OUT):
                    col = j * HALF + br * (POOLED * CONV_OUT) + p * CONV_OUT + c
                    bc[col] = bt[c]
                    for k in range(CONV_K):
                        r0 = br * NEIGH * EMBED_SIZE + (t + k) * EMBED_SIZE
                        Wc[r0:r0 + EMBED_SIZE, col] = wt[c, :, k]
    return Wc, bc


def build_head(w1_t, b1):
    """Permute W1 rows from torch order (mf | user c-major | item c-major)
    to kernel order (mf | user p-major | item p-major); pack b1 as an extra row."""
    perm = list(range(EMBED_SIZE))
    for br in range(2):
        base = EMBED_SIZE + br * (CONV_OUT * POOLED)
        for p in range(POOLED):
            for c in range(CONV_OUT):
                perm.append(base + c * POOLED + p)
    w1k = np.asarray(w1_t)[np.asarray(perm), :]                  # (80, 32)
    p_head = np.zeros((HEAD_PAD, HIDDEN), np.float32)
    p_head[:F_IN] = w1k
    p_head[F_IN] = np.asarray(b1)
    return p_head


if __name__ == "__main__":
    key = jax.random.PRNGKey(0)
    ks = jax.random.split(key, 16)

    # --- deterministic parameter init (shapes from NNCF.__init__) ---
    user_embedding    = jax.random.normal(ks[0], (NUM_USERS, EMBED_SIZE), jnp.float32) * 0.1
    items_embedding   = jax.random.normal(ks[1], (NUM_ITEMS, EMBED_SIZE), jnp.float32) * 0.1
    user_neigh_embed  = jax.random.normal(ks[2], (NUM_ITEMS, EMBED_SIZE), jnp.float32) * 0.1
    items_neigh_embed = jax.random.normal(ks[3], (NUM_USERS, EMBED_SIZE), jnp.float32) * 0.1
    wu_t = jax.random.normal(ks[4], (CONV_OUT, EMBED_SIZE, CONV_K), jnp.float32) * 0.1  # Conv1d weight
    bu   = jax.random.normal(ks[5], (CONV_OUT,), jnp.float32) * 0.1
    wi_t = jax.random.normal(ks[6], (CONV_OUT, EMBED_SIZE, CONV_K), jnp.float32) * 0.1
    bi   = jax.random.normal(ks[7], (CONV_OUT,), jnp.float32) * 0.1
    w1_t = jax.random.normal(ks[8], (F_IN, HIDDEN), jnp.float32) * 0.1                  # hidden Linear (x @ W)
    b1   = jax.random.normal(ks[9], (HIDDEN,), jnp.float32) * 0.1
    wout = jax.random.normal(ks[10], (HIDDEN, 1), jnp.float32) * 0.1                    # out Linear, no bias

    # --- dataset neighbor tables + example inputs ---
    u_neigh = jax.random.randint(ks[11], (NUM_USERS, NEIGH), 0, NUM_ITEMS)
    i_neigh = jax.random.randint(ks[12], (NUM_ITEMS, NEIGH), 0, NUM_USERS)
    user    = jax.random.randint(ks[13], (B,), 0, NUM_USERS)
    items   = jax.random.randint(ks[14], (B, D), 0, NUM_ITEMS)

    # --- glue: embedding gathers + activation packing (plain JAX) ---
    BD = B * D
    user_rep    = jnp.repeat(user[:, None], D, axis=1)                                  # (B, D)
    user_embed  = user_embedding[user_rep].reshape(BD, EMBED_SIZE)
    items_embed = items_embedding[items].reshape(BD, EMBED_SIZE)
    u_neigh_emb = user_neigh_embed[u_neigh[user_rep]].reshape(BD, NEIGH * EMBED_SIZE)
    i_neigh_emb = items_neigh_embed[i_neigh[items]].reshape(BD, NEIGH * EMBED_SIZE)

    emb   = jnp.concatenate([user_embed, items_embed], axis=-1)                         # (BD, 64)
    neigh = jnp.concatenate([u_neigh_emb, i_neigh_emb], axis=-1)                        # (BD, 512)

    # --- packed parameter slabs ---
    Wc, bc = build_conv_block(wu_t, bu, wi_t, bi)
    p_conv_np = np.zeros((CONV_PAD, 2 * HALF), np.float32)
    p_conv_np[:NROWS] = Wc
    p_conv_np[NROWS] = bc
    p_head_np = build_head(w1_t, b1)
    p_out_np = np.zeros((HIDDEN, OUT_PAD), np.float32)
    p_out_np[:, 0] = np.asarray(wout)[:, 0]

    p_conv = jnp.asarray(p_conv_np)
    p_head = jnp.asarray(p_head_np)
    p_out  = jnp.asarray(p_out_np)

    out_full = nncf_forward(emb, neigh, p_conv, p_head, p_out)
    out = out_full[:, 0].reshape(B, D)                                                  # == torch .squeeze()
    jax.block_until_ready(out)

    # --- pure-JAX reference mirroring the PyTorch forward (sanity check) ---
    def ref_forward():
        def conv_branch(emb4, w_t, bias):                       # emb4: (B, D, NEIGH, E)
            x = emb4.reshape(BD, NEIGH, EMBED_SIZE).transpose(0, 2, 1)      # (BD, E, N)
            conv = jnp.stack([jnp.einsum('bek,cek->bc', x[:, :, t:t + CONV_K], w_t)
                              for t in range(CONVED)], axis=-1) + bias[None, :, None]
            pooled = jnp.stack([conv[:, :, p * POOL_K:p * POOL_K + POOL_K].max(-1)
                                for p in range(POOLED)], axis=-1)           # (BD, C, POOLED)
            return jnp.maximum(pooled, 0.0).reshape(BD, -1)                 # c-major flatten
        mf = (user_embedding[user_rep] * items_embedding[items]).reshape(BD, EMBED_SIZE)
        uf = conv_branch(user_neigh_embed[u_neigh[user_rep]], wu_t, bu)
        itf = conv_branch(items_neigh_embed[i_neigh[items]], wi_t, bi)
        last = jnp.concatenate([mf, uf, itf], axis=-1)
        h = jnp.maximum(last @ w1_t + b1[None, :], 0.0)
        return (h @ wout).reshape(B, D)

    ref = ref_forward()
    np.testing.assert_allclose(np.asarray(out), np.asarray(ref), rtol=1e-4, atol=1e-4)
    print("KERNEL_OK")
</pallas_src>

<mosaic_0001>
module attributes {stable_mosaic.version = 11 : i64} {
  func.func @nncf_kernel(%arg0: memref<8x64xf32, #tpu.memory_space<vmem>>, %arg1: memref<8x512xf32, #tpu.memory_space<vmem>>, %arg2: memref<520x96xf32, #tpu.memory_space<vmem>>, %arg3: memref<88x32xf32, #tpu.memory_space<vmem>>, %arg4: memref<32x128xf32, #tpu.memory_space<vmem>>, %arg5: memref<8x128xf32, #tpu.memory_space<vmem>>) attributes {dimension_semantics = [], scalar_prefetch = 0 : i64, scratch_operands = 0 : i64, tpu.core_type = #tpu.core_type<tc>} {
    %c0 = arith.constant 0 : index
    %c0_0 = arith.constant 0 : index
    %0 = vector.load %arg0[%c0, %c0_0] : memref<8x64xf32, #tpu.memory_space<vmem>>, vector<8x32xf32>
    %c0_1 = arith.constant 0 : index
    %c32 = arith.constant 32 : index
    %1 = vector.load %arg0[%c0_1, %c32] : memref<8x64xf32, #tpu.memory_space<vmem>>, vector<8x32xf32>
    %2 = arith.mulf %0, %1 : vector<8x32xf32>
    %c0_2 = arith.constant 0 : index
    %c0_3 = arith.constant 0 : index
    %3 = vector.load %arg2[%c0_2, %c0_3] : memref<520x96xf32, #tpu.memory_space<vmem>>, vector<512x96xf32>
    %c512 = arith.constant 512 : index
    %c0_4 = arith.constant 0 : index
    %4 = vector.load %arg2[%c512, %c0_4] : memref<520x96xf32, #tpu.memory_space<vmem>>, vector<1x96xf32>
    %c0_5 = arith.constant 0 : index
    %c0_6 = arith.constant 0 : index
    %5 = vector.load %arg1[%c0_5, %c0_6] : memref<8x512xf32, #tpu.memory_space<vmem>>, vector<8x512xf32>
    %cst = arith.constant dense<0.000000e+00> : vector<8x96xf32>
    %6 = tpu.matmul %5, %3, %cst {dimension_numbers = #tpu.dot_dimension_numbers<[1], [0], [0], [1], [0, 0, 1, 1], [], []>} : vector<8x512xf32>, vector<512x96xf32>, vector<8x96xf32> -> vector<8x96xf32>
    %7 = vector.broadcast %4 : vector<1x96xf32> to vector<8x96xf32>
    %8 = arith.addf %6, %7 : vector<8x96xf32>
    %9 = vector.extract_strided_slice %8 {offsets = [0, 0], sizes = [8, 48], strides = [1, 1]} : vector<8x96xf32> to vector<8x48xf32>
    %10 = vector.extract_strided_slice %8 {offsets = [0, 48], sizes = [8, 48], strides = [1, 1]} : vector<8x96xf32> to vector<8x48xf32>
    %11 = arith.maximumf %9, %10 : vector<8x48xf32>
    %cst_7 = arith.constant 0.000000e+00 : f32
    %12 = vector.broadcast %cst_7 : f32 to vector<8x48xf32>
    %13 = arith.maximumf %11, %12 : vector<8x48xf32>
    %c0_8 = arith.constant 0 : index
    %c0_9 = arith.constant 0 : index
    %14 = vector.load %arg3[%c0_8, %c0_9] : memref<88x32xf32, #tpu.memory_space<vmem>>, vector<32x32xf32>
    %cst_10 = arith.constant dense<0.000000e+00> : vector<8x32xf32>
    %15 = tpu.matmul %2, %14, %cst_10 {dimension_numbers = #tpu.dot_dimension_numbers<[1], [0], [0], [1], [0, 0, 1, 1], [], []>} : vector<8x32xf32>, vector<32x32xf32>, vector<8x32xf32> -> vector<8x32xf32>
    %c32_11 = arith.constant 32 : index
    %c0_12 = arith.constant 0 : index
    %16 = vector.load %arg3[%c32_11, %c0_12] : memref<88x32xf32, #tpu.memory_space<vmem>>, vector<48x32xf32>
    %cst_13 = arith.constant dense<0.000000e+00> : vector<8x32xf32>
    %17 = tpu.matmul %13, %16, %cst_13 {dimension_numbers = #tpu.dot_dimension_numbers<[1], [0], [0], [1], [0, 0, 1, 1], [], []>} : vector<8x48xf32>, vector<48x32xf32>, vector<8x32xf32> -> vector<8x32xf32>
    %18 = arith.addf %15, %17 : vector<8x32xf32>
    %c80 = arith.constant 80 : index
    %c0_14 = arith.constant 0 : index
    %19 = vector.load %arg3[%c80, %c0_14] : memref<88x32xf32, #tpu.memory_space<vmem>>, vector<1x32xf32>
    %20 = vector.broadcast %19 : vector<1x32xf32> to vector<8x32xf32>
    %21 = arith.addf %18, %20 : vector<8x32xf32>
    %cst_15 = arith.constant 0.000000e+00 : f32
    %22 = vector.broadcast %cst_15 : f32 to vector<8x32xf32>
    %23 = arith.maximumf %21, %22 : vector<8x32xf32>
    %c0_16 = arith.constant 0 : index
    %c0_17 = arith.constant 0 : index
    %24 = vector.load %arg4[%c0_16, %c0_17] : memref<32x128xf32, #tpu.memory_space<vmem>>, vector<32x128xf32>
    %cst_18 = arith.constant dense<0.000000e+00> : vector<8x128xf32>
    %25 = tpu.matmul %23, %24, %cst_18 {dimension_numbers = #tpu.dot_dimension_numbers<[1], [0], [0], [1], [0, 0, 1, 1], [], []>} : vector<8x32xf32>, vector<32x128xf32>, vector<8x128xf32> -> vector<8x128xf32>
    %c0_19 = arith.constant 0 : index
    %c0_20 = arith.constant 0 : index
    %26 = vector.load %arg5[%c0_19, %c0_20] : memref<8x128xf32, #tpu.memory_space<vmem>>, vector<8x128xf32>
    tpu.vector_store %arg5[%c0_19, %c0_20], %25 {strides = array<i32>} : memref<8x128xf32, #tpu.memory_space<vmem>>, vector<8x128xf32>,
    return
  }
}

</mosaic_0001>

<bundles_post_ra>
// kernel: tpu_custom_call.1
= control target key start
LH: loop header
LB: loop body
LE: loop exit
PB: predicated region body
PF: predicated region fallthrough
CT: control target
= control target key end

     0   :  { %s1055_s0 = inlined_call_operand.vmem [shape: f32[8,64], index: 0, kind: input, shape index: {}]   ;;  %s1056_s1 = inlined_call_operand.vmem [shape: f32[8,512], index: 1, kind: input, shape index: {}]   ;;  %s1057_s2 = inlined_call_operand.vmem [shape: f32[520,96], index: 2, kind: input, shape index: {}]   ;;  %s1058_s3 = inlined_call_operand.vmem [shape: f32[88,32], index: 3, kind: input, shape index: {}]   ;;  %s1059_s4 = inlined_call_operand.vmem [shape: f32[32,128], index: 4, kind: input, shape index: {}]   ;;  %s1060_s5 = inlined_call_operand.hbm [shape: f32[8,128], index: 5, kind: output, shape index: {}]  }
   0x1   :  { %v43_v0 = vld [vmem:[%s1057_s2 + $0x80] sm:$0xff]  ;;  %v44_v1 = vld [vmem:[%s1057_s2 + $0x88] sm:$0xff]  ;;  %v45_v11 = vld [vmem:[%s1057_s2 + $0x90] sm:$0xff] }
   0x2   :  { %v27_v2 = vld [vmem:[%s1057_s2] sm:$0xff]  ;;  %v632_v3 = vpack.c.bf16 %v44_v1, %v43_v0  ;;  %v28_v4 = vld [vmem:[%s1057_s2 + $0x8] sm:$0xff]  ;;  %v46_v13 = vld [vmem:[%s1057_s2 + $0x98] sm:$0xff] }
   0x3   :  { %v75_v5 = vld [vmem:[%s1057_s2 + $0x180] sm:$0xff]  ;;  %v76_v6 = vld [vmem:[%s1057_s2 + $0x188] sm:$0xff]  ;;  %v634_v7 = vpack.c.bf16 %v28_v4, %v27_v2  ;;  %v29_v14 = vld [vmem:[%s1057_s2 + $0x10] sm:$0xff]  ;;  %v636_v16 = vpack.c.bf16 %v46_v13, %v45_v11 }
   0x4   :  { %v664_v8 = vpack.c.bf16 %v76_v6, %v75_v5  ;;  %v59_v9 = vld [vmem:[%s1057_s2 + $0x100] sm:$0xff]  ;;  %v60_v10 = vld [vmem:[%s1057_s2 + $0x108] sm:$0xff]  ;;  %633 = vmatprep.subr.bf16.mxu0 %v632_v3  ;;  %v30_v15 = vld [vmem:[%s1057_s2 + $0x18] sm:$0xff] }
   0x5   :  { %v666_v12 = vpack.c.bf16 %v60_v10, %v59_v9  ;;  %635 = vmatpush3.bf16.msra.mxu0 %v634_v7  ;;  %v638_v17 = vpack.c.bf16 %v30_v15, %v29_v14  ;;  %v77_v18 = vld [vmem:[%s1057_s2 + $0x190] sm:$0xff]  ;;  %v78_v19 = vld [vmem:[%s1057_s2 + $0x198] sm:$0xff]  ;;  %v47_v23 = vld [vmem:[%s1057_s2 + $0xa0] sm:$0xff] }
   0x6   :  { %665 = vmatprep.subr.bf16.mxu1 %v664_v8  ;;  %v61_v20 = vld [vmem:[%s1057_s2 + $0x110] sm:$0xff]  ;;  %v668_v21 = vpack.c.bf16 %v78_v19, %v77_v18  ;;  %v62_v22 = vld [vmem:[%s1057_s2 + $0x118] sm:$0xff]  ;;  %v48_v24 = vld [vmem:[%s1057_s2 + $0xa8] sm:$0xff]  ;;  %637 = vmatprep.subr.bf16.mxu0 %v636_v16 }
   0x7   :  { %667 = vmatpush3.bf16.msra.mxu1 %v666_v12  ;;  %v670_v25 = vpack.c.bf16 %v62_v22, %v61_v20  ;;  %v640_v26 = vpack.c.bf16 %v48_v24, %v47_v23  ;;  %v31_v27 = vld [vmem:[%s1057_s2 + $0x20] sm:$0xff]  ;;  %v32_v28 = vld [vmem:[%s1057_s2 + $0x28] sm:$0xff]  ;;  %v49_v35 = vld [vmem:[%s1057_s2 + $0xb0] sm:$0xff] }
   0x8   :  { %v79_v29 = vld [vmem:[%s1057_s2 + $0x1a0] sm:$0xff]  ;;  %669 = vmatprep.subr.bf16.mxu1 %v668_v21  ;;  %v80_v30 = vld [vmem:[%s1057_s2 + $0x1a8] sm:$0xff]  ;;  %v642_v33 = vpack.c.bf16 %v32_v28, %v31_v27  ;;  %v50_v36 = vld [vmem:[%s1057_s2 + $0xb8] sm:$0xff] }
   0x9   :  { %v63_v31 = vld [vmem:[%s1057_s2 + $0x120] sm:$0xff]  ;;  %v64_v32 = vld [vmem:[%s1057_s2 + $0x128] sm:$0xff]  ;;  %639 = vmatpush3.bf16.msra.mxu0 %v638_v17  ;;  %v672_v34 = vpack.c.bf16 %v80_v30, %v79_v29  ;;  %v33_v37 = vld [vmem:[%s1057_s2 + $0x30] sm:$0xff]  ;;  %v644_v39 = vpack.c.bf16 %v50_v36, %v49_v35 }
   0xa   :  { %641 = vmatprep.subr.bf16.mxu0 %v640_v26  ;;  %v674_v38 = vpack.c.bf16 %v64_v32, %v63_v31  ;;  %v34_v40 = vld [vmem:[%s1057_s2 + $0x38] sm:$0xff]  ;;  %v81_v41 = vld [vmem:[%s1057_s2 + $0x1b0] sm:$0xff]  ;;  %v51_v46 = vld [vmem:[%s1057_s2 + $0xc0] sm:$0xff] }
   0xb   :  { %671 = vmatpush3.bf16.msra.mxu1 %v670_v25  ;;  %v82_v42 = vld [vmem:[%s1057_s2 + $0x1b8] sm:$0xff]  ;;  %v65_v44 = vld [vmem:[%s1057_s2 + $0x130] sm:$0xff]  ;;  %v52_v47 = vld [vmem:[%s1057_s2 + $0xc8] sm:$0xff]  ;;  %v646_v48 = vpack.c.bf16 %v34_v40, %v33_v37 }
   0xc   :  { %673 = vmatprep.subr.bf16.mxu1 %v672_v34  ;;  %v676_v43 = vpack.c.bf16 %v82_v42, %v81_v41  ;;  %v66_v45 = vld [vmem:[%s1057_s2 + $0x138] sm:$0xff]  ;;  %v83_v49 = vld [vmem:[%s1057_s2 + $0x1c0] sm:$0xff]  ;;  %v84_v50 = vld [vmem:[%s1057_s2 + $0x1c8] sm:$0xff]  ;;  %v648_v52 = vpack.c.bf16 %v52_v47, %v51_v46 }
   0xd   :  { %643 = vmatpush3.bf16.msra.mxu0 %v642_v33  ;;  %v678_v51 = vpack.c.bf16 %v66_v45, %v65_v44  ;;  %v35_v53 = vld [vmem:[%s1057_s2 + $0x40] sm:$0xff]  ;;  %v36_v54 = vld [vmem:[%s1057_s2 + $0x48] sm:$0xff]  ;;  %v680_v56 = vpack.c.bf16 %v84_v50, %v83_v49  ;;  %v53_v58 = vld [vmem:[%s1057_s2 + $0xd0] sm:$0xff] }
   0xe   :  { %645 = vmatprep.subr.bf16.mxu0 %v644_v39  ;;  %v67_v55 = vld [vmem:[%s1057_s2 + $0x140] sm:$0xff]  ;;  %v68_v57 = vld [vmem:[%s1057_s2 + $0x148] sm:$0xff]  ;;  %v54_v59 = vld [vmem:[%s1057_s2 + $0xd8] sm:$0xff]  ;;  %v650_v62 = vpack.c.bf16 %v36_v54, %v35_v53 }
   0xf   :  { %675 = vmatpush3.bf16.msra.mxu1 %v674_v38  ;;  %v85_v60 = vld [vmem:[%s1057_s2 + $0x1d0] sm:$0xff]  ;;  %v86_v61 = vld [vmem:[%s1057_s2 + $0x1d8] sm:$0xff]  ;;  %v682_v63 = vpack.c.bf16 %v68_v57, %v67_v55  ;;  %v652_v0 = vpack.c.bf16 %v54_v59, %v53_v58  ;;  %v55_v6 = vld [vmem:[%s1057_s2 + $0xe0] sm:$0xff] }
  0x10   :  { %677 = vmatprep.subr.bf16.mxu1 %v676_v43  ;;  %v37_v1 = vld [vmem:[%s1057_s2 + $0x50] sm:$0xff]  ;;  %v38_v2 = vld [vmem:[%s1057_s2 + $0x58] sm:$0xff]  ;;  %v684_v4 = vpack.c.bf16 %v86_v61, %v85_v60  ;;  %v56_v7 = vld [vmem:[%s1057_s2 + $0xe8] sm:$0xff] }
  0x11   :  { %647 = vmatpush3.bf16.msra.mxu0 %v646_v48  ;;  %v69_v3 = vld [vmem:[%s1057_s2 + $0x150] sm:$0xff]  ;;  %v70_v5 = vld [vmem:[%s1057_s2 + $0x158] sm:$0xff]  ;;  %v87_v8 = vld [vmem:[%s1057_s2 + $0x1e0] sm:$0xff]  ;;  %v654_v10 = vpack.c.bf16 %v38_v2, %v37_v1  ;;  %v656_v15 = vpack.c.bf16 %v56_v7, %v55_v6 }
  0x12   :  { %649 = vmatprep.subr.bf16.mxu0 %v648_v52  ;;  %v88_v9 = vld [vmem:[%s1057_s2 + $0x1e8] sm:$0xff]  ;;  %v39_v11 = vld [vmem:[%s1057_s2 + $0x60] sm:$0xff]  ;;  %v686_v14 = vpack.c.bf16 %v70_v5, %v69_v3  ;;  %v57_v17 = vld [vmem:[%s1057_s2 + $0xf0] sm:$0xff] }
  0x13   :  { %679 = vmatpush3.bf16.msra.mxu1 %v678_v51  ;;  %v40_v12 = vld [vmem:[%s1057_s2 + $0x68] sm:$0xff]  ;;  %v71_v13 = vld [vmem:[%s1057_s2 + $0x160] sm:$0xff]  ;;  %v688_v19 = vpack.c.bf16 %v88_v9, %v87_v8  ;;  %v58_v20 = vld [vmem:[%s1057_s2 + $0xf8] sm:$0xff] }
  0x14   :  { %681 = vmatprep.subr.bf16.mxu1 %v680_v56  ;;  %v72_v16 = vld [vmem:[%s1057_s2 + $0x168] sm:$0xff]  ;;  %v95_v21 = vld [vmem:[%s1056_s1 + $0x18] sm:$0xff] }
  0x15   :  { %651 = vmatpush3.bf16.msra.mxu0 %v650_v62  ;;  %v93_v18 = vld [vmem:[%s1056_s1 + $0x8] sm:$0xff] }
  0x16   :  { %653 = vmatprep.subr.bf16.mxu0 %v652_v0  ;;  %164 = vmatprep.mubr.f32.mxu0 %v93_v18 }
  0x17   :  { %683 = vmatpush3.bf16.msra.mxu1 %v682_v63 }
  0x18   :  { %685 = vmatprep.subr.bf16.mxu1 %v684_v4 }
  0x19   :  { %10 = vsyncpa [#allocation3], 0  ;;  %v89_v22 = vld [vmem:[%s1057_s2 + $0x1f0] sm:$0xff]  ;;  %v90_v23 = vld [vmem:[%s1057_s2 + $0x1f8] sm:$0xff]  ;;  %234 = vmatprep.mubr.f32.mxu1 %v95_v21  ;;  %655 = vmatpush3.bf16.msra.mxu0 %v654_v10  ;;  %v658_v24 = vpack.c.bf16 %v40_v12, %v39_v11  ;;  %v690_v25 = vpack.c.bf16 %v72_v16, %v71_v13  ;;  %v660_v26 = vpack.c.bf16 %v58_v20, %v57_v17  ;;  %v747_v39 = vmov 0.0|0.0   ;;  %s750_s25 = smov 80  }
  0x1a   :  { %657 = vmatprep.subr.bf16.mxu0 %v656_v15  ;;  %v41_v27 = vld [vmem:[%s1057_s2 + $0x70] sm:$0xff]  ;;  %v42_v28 = vld [vmem:[%s1057_s2 + $0x78] sm:$0xff]  ;;  %v692_v29 = vpack.c.bf16 %v90_v23, %v89_v22  ;;  %v92_v34 = vld [vmem:[%s1056_s1] sm:$0xff]  ;;  %vm748_vm0 = vmmov 0   ;;  %v749_v52 = vmov 0.0   ;;  %s751_s28 = smov 96  }
  0x1b   :  { %687 = vmatpush3.bf16.msra.mxu1 %v686_v14  ;;  %v73_v30 = vld [vmem:[%s1057_s2 + $0x170] sm:$0xff]  ;;  %v74_v31 = vld [vmem:[%s1057_s2 + $0x178] sm:$0xff]  ;;  %v662_v32 = vpack.c.bf16 %v42_v28, %v41_v27  ;;  %v250_v36 = vld [vmem:[%s1058_s3 + $0x20] sm:$0xff]  ;;  %vm256_vm1 = vcmask 392192   ;;  %vm330_vm2 = vcmask 261120  }
  0x1c   :  { %689 = vmatprep.subr.bf16.mxu1 %v688_v19  ;;  %v694_v33 = vpack.c.bf16 %v74_v31, %v73_v30  ;;  %v94_v35 = vld [vmem:[%s1056_s1 + $0x10] sm:$0xff]  ;;  %v251_v37 = vld [vmem:[%s1058_s3 + $0x28] sm:$0xff]  ;;  %v253_v41 = vld [vmem:[%s1058_s3 + $0x38] sm:$0xff]  ;;  %s752_s1 = smov [#allocation2]  }
  0x1d   :  { %659 = vmatpush3.bf16.msra.mxu0 %v658_v24  ;;  %v252_v38 = vld [vmem:[%s1058_s3 + $0x30] sm:$0xff]  ;;  %v697_v40 = vpack.c.bf16 %v251_v37, %v250_v36  ;;  %v246_v42 = vld [vmem:[%s1058_s3] sm:$0xff]  ;;  %v247_v43 = vld [vmem:[%s1058_s3 + $0x8] sm:$0xff]  ;;  %s495_s12 = sshll.u32 %s752_s1, 4  ;;  %s496_s12 = int_to_ptr.vmem [resolvable:$true] %s495_s12 }
  0x1e   :  { %661 = vmatprep.subr.bf16.mxu0 %v660_v26  ;;  %v706_v44 = vpack.c.bf16 %v247_v43, %v246_v42  ;;  %v700_v45 = vpack.c.bf16 %v253_v41, %v252_v38  ;;  %v254_v46 = vld [vmem:[%s1058_s3 + $0x40] sm:$0xff]  ;;  %v255_v47 = vld [vmem:[%s1058_s3 + $0x48] sm:$0xff]  ;;  %v248_v49 = vld [vmem:[%s1058_s3 + $0x10] sm:$0xff]  ;;  %p728_p1 = scmp.lt.s32.totalorder %s496_s12, %s496_s12 }
  0x1f   :  { %691 = vmatpush3.bf16.msra.mxu1 %v690_v25  ;;  %v703_v48 = vpack.c.bf16 %v255_v47, %v254_v46  ;;  %v249_v50 = vld [vmem:[%s1058_s3 + $0x18] sm:$0xff]  ;;  %v503_v54 = vld [vmem:[%s1057_s2 + $0x200] ss:$0 sm:$0xff]  ;;  %v412_v5 = vld [vmem:[%s1059_s4 + $0x8] sm:$0xff] }
  0x20   :  { %693 = vmatprep.subr.bf16.mxu1 %v692_v29  ;;  %v709_v51 = vpack.c.bf16 %v249_v50, %v248_v49  ;;  %v21_v62 = vld [vmem:[%s1055_s0] sm:$0xff]  ;;  %v413_v7 = vld [vmem:[%s1059_s4 + $0x10] sm:$0xff]  ;;  %v414_v8 = vld [vmem:[%s1059_s4 + $0x18] sm:$0xff] }
  0x21   :  { %663 = vmatpush3.bf16.msra.mxu0 %v662_v32  ;;  %v411_v4 = vld [vmem:[%s1059_s4] sm:$0xff]  ;;  %v715_v9 = vpack.c.bf16 %v414_v8, %v413_v7  ;;  %v506_v13 = vld [vmem:[%s1058_s3 + $0x50] ss:$0 sm:$0xff]  ;;  %s723_s4 = scalar_lea.vmem %s496_s12, 128 }
  0x22   :  { %696 = vmatprep.subr.bf16.mxu0 %v747_v39  ;;  %v712_v6 = vpack.c.bf16 %v412_v5, %v411_v4  ;;  %p724_p0 = scmp.ne.s32.totalorder %s496_s12, %s723_s4  ;;  %p729_p2 = scmp.lt.s32.totalorder %s723_s4, %s723_s4 }
  0x23   :  { %695 = vmatpush3.bf16.msra.mxu1 %v694_v33 }
  0x24   :  { %165 = vmatmul.mubr.f32.vlgmr.msra.gmra.mrb[0].mxu0 %v92_v34  ;;  %705 = vmatprep.subr.bf16.mxu1 %v747_v39  ;;  %p730_p3 = por %p729_p2, %p728_p1 }
  0x25   :  { %698 = vmatpush3.bf16.msra.mxu0 %v697_v40  ;;  %607 = vmatprep.mubr.msk.f32.mxu0 %vm748_vm0, %v749_v52 }
  0x26   :  { %235 = vmatmul.mubr.f32.vlgmr.msra.gmra.mrb[0].mxu1 %v94_v35  ;;  %699 = vmatprep.subr.bf16.mxu0 %v747_v39  ;;  %p731_p4 = pnand %p730_p3, %p724_p0 }
  0x27   :  { %707 = vmatpush3.bf16.msra.mxu1 %v706_v44  ;;  %618 = vmatprep.mubr.msk.f32.mxu1 %vm748_vm0, %v749_v52 }
  0x28   :  { %708 = vmatprep.subr.bf16.mxu1 %v747_v39 }
  0x29   :  { %701 = vmatpush3.bf16.msra.mxu0 %v700_v45 }
  0x2a   :  { %702 = vmatprep.subr.bf16.mxu0 %v747_v39 }
  0x2b   :  { %710 = vmatpush3.bf16.msra.mxu1 %v709_v51 }
  0x2c   :  { %711 = vmatprep.subr.bf16.mxu1 %v747_v39 }
  0x2d   :  { %704 = vmatpush3.bf16.msra.mxu0 %v703_v48 }
  0xf7   :  { %v540_v53 = vpop.f32.mrb[0].mxu0 }
  0xf8   :  { %v541_v55 = vpop.f32.mrb[1].mxu0 }
  0xf9   :  { %v575_v56 = vpop.f32.mrb[0].mxu1  ;;  %v542_v57 = vadd.f32 %v541_v55, %v540_v53 }
  0xfa   :  { %v576_v58 = vpop.f32.mrb[1].mxu1 }
  0xfb   :  { %v577_v59 = vadd.f32 %v576_v58, %v575_v56  ;;  %v167_v60 = vadd.f32 %v542_v57, %v503_v54 }
  0xfd   :  { %v237_v61 = vadd.f32 %v577_v59, %v167_v60 }
  0xff   :  { %241 = vrot.lane.b32.xlu0 %v237_v61, %s750_s25 }
 0x103   :  { %23 = vrot.lane.b32.xlu0 %v21_v62, %s751_s28 }
 0x171   :  { %v242_v63 = vpop.permute.xlu0 %241 }
 0x172   :  { %v244_v0 = vmax.f32 %v237_v61, %v242_v63 }
 0x174   :  { %v245_v1 = vmax.f32 %v244_v0, 0.0 }
 0x175   :  { %v24_v2 = vpop.permute.xlu0 %23 }
 0x176   :  { %v26_v3 = vmul.f32 %v24_v2, %v21_v62  ;;  %608 = vmatmul.mubr.msk.f32.vlgmr.msra.gmra.mrb[2].mxu0 %vm256_vm1, %v245_v1 }
 0x178   :  { %619 = vmatmul.mubr.msk.f32.vlgmr.msra.gmra.mrb[2].mxu1 %vm330_vm2, %v26_v3 }
 0x179   :  { %629 = vmatprep.mubr.msk.f32.mxu1 %vm748_vm0, %v749_v52  ;;  %713 = vmatpush3.bf16.msra.mxu1 %v712_v6 }
 0x17a   :  { %714 = vmatprep.subr.bf16.mxu1 %v747_v39 }
 0x17d   :  { %716 = vmatpush3.bf16.msra.mxu1 %v715_v9 }
 0x249   :  { %v326_v10 = vpop.f32.mrb[2].mxu0 }
 0x24a   :  { %v609_v11 = vpop.f32.mrb[3].mxu0 }
 0x24b   :  { %v400_v12 = vpop.f32.mrb[2].mxu1 }
 0x24c   :  { %v401_v14 = vadd.f32 %v400_v12, %v326_v10  ;;  %v620_v15 = vpop.f32.mrb[3].mxu1 }
 0x24e   :  { %v409_v16 = vadd.f32 %v506_v13, %v401_v14 }
 0x250   :  { %v410_v17 = vmax.f32 %v409_v16, 0.0 }
 0x252   :  { %630 = vmatmul.mubr.msk.f32.vlgmr.msra.gmra.mrb[4].mxu1 %vm330_vm2, %v410_v17 }
 0x325   :  { %v484_v18 = vpop.f32.mrb[4].mxu1 }
 0x326   :  { %488 = vst [vmem:[#allocation2] sm:$0xff] %v484_v18  ;;  %v631_v19 = vpop.f32.mrb[5].mxu1 }
 0x327   :  { %734 = shalt.err (!%p731_p4)
}
 0x328   :  { %s735_s14 = scalar_lea.hbm %s1060_s5, 128 }
 0x329   :  { %p736_p5 = scmp.ne.s32.totalorder %s1060_s5, %s735_s14  ;;  %p739_p6 = scmp.lt.u32.totalorder %s735_s14, %s1060_s5 }
 0x32b   :  { %p741_p7 = pnand %p739_p6, %p736_p5 }
 0x32d   :  { %744 = shalt.err (!%p741_p7)
}
 0x32e   :  { %498 = dma.vmem_to_hbm [thread:$0]  %s496_s12, 128, %s1060_s5, [#allocation3]  }
 0x32f   :  { %745 = dma.done.wait [#allocation3], 128  }
 0x330   :  { %746 = vsyncadd [#allocation3], 4294967168 }
 0x331   :  { %502 = vsyncpa [#allocation3], 1 }

</bundles_post_ra>
